<compile_context>
chip_gen: v7x
topology: tpu7x:2x2x1
jax: 0.10.0
libtpu: 0.0.40
codegen_flags: <defaults>
</compile_context>

<pallas_src>
import functools

import jax
import jax.numpy as jnp
from jax.experimental import pallas as pl
from jax.experimental.pallas import tpu as pltpu


def _round_up(x, m):
    return (x + m - 1) // m * m


def _mha_map_kernel(w_ref, b_ref, k_ref, *rest, has_mask):
    # w_ref:   (1, R, qd)   per-batch effective weights (R = Q * num_heads)
    # b_ref:   (1, R, 1)    per-row effective bias
    # k_ref:   (1, qd, tS)  channels-major voxel tile
    # mask_ref (optional): (1, 1, tS) (1.0 -> masked)
    # o_ref:   (1, R, tS)   output tile, already in final layout
    if has_mask:
        mask_ref, o_ref = rest
    else:
        mask_ref = None
        (o_ref,) = rest

    scores = jnp.dot(w_ref[0], k_ref[0],
                     preferred_element_type=jnp.float32) + b_ref[0]
    if has_mask:
        # masked_fill(-inf) BEFORE sigmoid, exactly like the PyTorch module.
        scores = jnp.where(mask_ref[0] > 0.5, jnp.float32(-jnp.inf), scores)
    o_ref[0] = jax.nn.sigmoid(scores).astype(o_ref.dtype)


def mh_attention_map(q, k, wq, bq, wk, bk, *, num_heads, mask=None,
                     tile_s=None, out_dtype=jnp.float32):
    """q: (B, Q, qd) f32; k: (B, qd, W, H, D) f32; mask: optional (B, W, H, D) bool.
    Returns (B, Q, num_heads, W, H, D) sigmoid attention maps (out_dtype)."""
    B, Q, qd = q.shape
    _, qd_k, W, H, D = k.shape
    assert qd_k == qd
    hidden = wq.shape[0]
    assert hidden % num_heads == 0
    head_dim = hidden // num_heads
    norm = float(hidden / num_heads) ** (-0.5)
    S = W * H * D
    R = Q * num_heads
    has_mask = mask is not None

    # ---- fold q-projection + head split + conv weights into one per-batch
    #      effective weight/bias (tiny JAX ops on (B,Q,hidden)-sized data) ----
    qp = (q @ wq.T + bq) * norm                         # (B, Q, hidden)
    qh = qp.reshape(B, Q, num_heads, head_dim)          # (B, Q, nh, c)
    wk_h = wk.reshape(num_heads, head_dim, qd)          # (nh, c, qd)
    bk_h = bk.reshape(num_heads, head_dim)               # (nh, c)
    w_eff = jnp.einsum('bqnc,ncj->bqnj', qh, wk_h).reshape(B, R, qd)
    b_eff = jnp.einsum('bqnc,nc->bqn', qh, bk_h).reshape(B, R, 1)

    # ---- k stays channels-major; free reshape, NO pad, NO post-slice ----
    k_flat = k.reshape(B, qd, S)

    # ---- per-generation VMEM budgeting ----
    try:
        vmem_cap = int(pltpu.get_tpu_info().vmem_capacity_bytes)
    except Exception:
        vmem_cap = None

    if vmem_cap is not None and vmem_cap < 100 * 1024 * 1024:
        # v7x-class: 64 MiB VMEM, 3.2 TB/s HBM -> smaller tiles, deeper k pipe.
        tile_budget, ts_cap, vmem_ceiling, k_buffers = (14 << 20, 16384, 38 << 20, 3)
    elif vmem_cap is not None:
        # v5e/v6e: 128 MiB VMEM -> big lane-dense tiles amortize per-step cost.
        tile_budget, ts_cap, vmem_ceiling, k_buffers = (32 << 20, 32768, 64 << 20, 2)
    else:
        # Unknown chip: conservative budget safe on any generation.
        tile_budget, ts_cap, vmem_ceiling, k_buffers = (12 << 20, 16384, 32 << 20, 2)

    out_bytes = jnp.dtype(out_dtype).itemsize
    # Per-lane VMEM bytes: pipelined k (+mask) buffers, double-buffered output,
    # plus the f32 scores intermediate held before the store.
    per_lane = (k_buffers * qd * 4
                + 2 * R * out_bytes
                + (k_buffers * 4 if has_mask else 0)
                + R * 4)
    if tile_s is None:
        tile_s = tile_budget // per_lane
    tS = max(128, min(ts_cap, (tile_s // 128) * 128))
    tS = min(tS, _round_up(S, 128))
    n_s = pl.cdiv(S, tS)

    # Constant-index operands (w_eff, b_eff) are still double-buffered.
    fixed_bytes = 2 * 4 * (R * qd + _round_up(R, 8) * 128)
    vmem_limit = int(min(vmem_ceiling,
                         max(32 << 20, per_lane * tS + fixed_bytes + (6 << 20))))

    stream_kwargs = {} if k_buffers == 2 else dict(pipeline_mode=pl.Buffered(k_buffers))

    inputs = [w_eff, b_eff, k_flat]
    in_specs = [
        pl.BlockSpec((1, R, qd), lambda b, s: (b, 0, 0)),
        pl.BlockSpec((1, R, 1), lambda b, s: (b, 0, 0)),
        pl.BlockSpec((1, qd, tS), lambda b, s: (b, 0, s), **stream_kwargs),
    ]
    if has_mask:
        # TODO(synk): mask could be streamed as int8 to cut its (small) HBM
        # share 4x; kept f32 here for the simplest broadcast-select lowering.
        m_flat = mask.reshape(B, 1, S).astype(jnp.float32)
        inputs.append(m_flat)
        in_specs.append(pl.BlockSpec((1, 1, tS), lambda b, s: (b, 0, s),
                                     **stream_kwargs))

    kernel = functools.partial(_mha_map_kernel, has_mask=has_mask)

    out = pl.pallas_call(
        kernel,
        out_shape=jax.ShapeDtypeStruct((B, R, S), out_dtype),
        grid_spec=pltpu.PrefetchScalarGridSpec(
            num_scalar_prefetch=0,
            grid=(B, n_s),
            in_specs=in_specs,
            out_specs=pl.BlockSpec((1, R, tS), lambda b, s: (b, 0, s)),
        ),
        compiler_params=pltpu.CompilerParams(
            dimension_semantics=("parallel", "parallel"),
            vmem_limit_bytes=vmem_limit),
    )(*inputs)

    # (B, Q*nh, S) -> (B, Q, nh, W, H, D) is a free row-major reshape.
    return out.reshape(B, Q, num_heads, W, H, D)


def _xavier_uniform(key, shape):
    fan_out, fan_in = shape
    limit = (6.0 / (fan_in + fan_out)) ** 0.5
    return jax.random.uniform(key, shape, jnp.float32, -limit, limit)


def _reference(q, k, wq, bq, wk, bk, num_heads, mask=None):
    B, Q, qd = q.shape
    hidden = wq.shape[0]
    c = hidden // num_heads
    norm = float(hidden / num_heads) ** (-0.5)
    qp = q @ wq.T + bq                                                   # (B,Q,hidden)
    kp = jnp.einsum('bcwhd,oc->bowhd', k, wk) + bk[None, :, None, None, None]
    qh = qp.reshape(B, Q, num_heads, c)
    kh = kp.reshape(B, num_heads, c, *k.shape[-3:])
    w = jnp.einsum('bqnc,bncwhd->bqnwhd', qh * norm, kh)
    if mask is not None:
        w = jnp.where(mask[:, None, None], -jnp.inf, w)
    return jax.nn.sigmoid(w)


if __name__ == "__main__":
    # small, module-consistent shapes
    B, Q, query_dim = 2, 8, 32
    hidden_dim, num_heads = 32, 4

    key = jax.random.PRNGKey(0)
    kq, kk1, kk2, kk3, kwq, kwk, kbq, kbk, km2, km3 = jax.random.split(key, 10)

    q = jax.random.normal(kq, (B, Q, query_dim), jnp.float32)
    wq = _xavier_uniform(kwq, (hidden_dim, query_dim))
    wk = _xavier_uniform(kwk, (hidden_dim, query_dim))
    # non-zero biases to exercise the fused bias path (module has bias=True)
    bq = 0.1 * jax.random.normal(kbq, (hidden_dim,), jnp.float32)
    bk = 0.1 * jax.random.normal(kbk, (hidden_dim,), jnp.float32)

    # Case 1: S = 4*4*8 = 128 (exactly one lane-dense tile), no mask.
    W, H, D = 4, 4, 8
    k1 = jax.random.normal(kk1, (B, query_dim, W, H, D), jnp.float32)
    out1 = jax.block_until_ready(
        mh_attention_map(q, k1, wq, bq, wk, bk, num_heads=num_heads))
    ref1 = _reference(q, k1, wq, bq, wk, bk, num_heads)
    assert out1.shape == (B, Q, num_heads, W, H, D)
    assert jnp.allclose(out1, ref1, atol=1e-5, rtol=1e-5)

    # Case 2: S = 4*4*4 = 64 (< 128; single ragged block, masked output
    # stores handle the overhang) with a mask fused pre-sigmoid in-kernel.
    W2, H2, D2 = 4, 4, 4
    k2 = jax.random.normal(kk2, (B, query_dim, W2, H2, D2), jnp.float32)
    mask2 = jax.random.bernoulli(km2, 0.3, (B, W2, H2, D2))
    out2 = jax.block_until_ready(
        mh_attention_map(q, k2, wq, bq, wk, bk, num_heads=num_heads, mask=mask2))
    ref2 = _reference(q, k2, wq, bq, wk, bk, num_heads, mask=mask2)
    assert out2.shape == (B, Q, num_heads, W2, H2, D2)
    assert jnp.allclose(out2, ref2, atol=1e-5, rtol=1e-5)

    # Case 3: S = 4*8*10 = 320 with an explicit tile_s=128 -> multiple S tiles
    # with a ragged last tile (no wrapper pad, no post-kernel slice), + mask.
    W3, H3, D3 = 4, 8, 10
    k3 = jax.random.normal(kk3, (B, query_dim, W3, H3, D3), jnp.float32)
    mask3 = jax.random.bernoulli(km3, 0.3, (B, W3, H3, D3))
    out3 = jax.block_until_ready(
        mh_attention_map(q, k3, wq, bq, wk, bk, num_heads=num_heads,
                         mask=mask3, tile_s=128))
    ref3 = _reference(q, k3, wq, bq, wk, bk, num_heads, mask=mask3)
    assert out3.shape == (B, Q, num_heads, W3, H3, D3)
    assert jnp.allclose(out3, ref3, atol=1e-5, rtol=1e-5)

    # dropout(p=0.0) is identity at inference; nothing to do.
    print("KERNEL_OK")
</pallas_src>

<mosaic_0001>
module attributes {stable_mosaic.version = 11 : i64} {
  func.func @_mha_map_kernel(%arg0: i32, %arg1: i32, %arg2: memref<1x32x32xf32, #tpu.memory_space<vmem>>, %arg3: memref<1x32x1xf32, #tpu.memory_space<vmem>>, %arg4: memref<1x32x128xf32, #tpu.memory_space<vmem>>, %arg5: memref<1x32x128xf32, #tpu.memory_space<vmem>>) attributes {dimension_semantics = [#tpu.dimension_semantics<parallel>, #tpu.dimension_semantics<parallel>], iteration_bounds = array<i64: 2, 1>, scalar_prefetch = 0 : i64, scratch_operands = 0 : i64, tpu.core_type = #tpu.core_type<tc>, window_params = [{transform_indices = @transform_0, window_bounds = array<i64: 1, 32, 32>}, {transform_indices = @transform_1, window_bounds = array<i64: 1, 32, 1>}, {transform_indices = @transform_2, window_bounds = array<i64: 1, 32, 128>}, {transform_indices = @transform_3, window_bounds = array<i64: 1, 32, 128>}]} {
    %c0 = arith.constant 0 : index
    %c0_0 = arith.constant 0 : index
    %c0_1 = arith.constant 0 : index
    %0 = vector.load %arg2[%c0, %c0_0, %c0_1] : memref<1x32x32xf32, #tpu.memory_space<vmem>>, vector<1x32x32xf32>
    %1 = vector.shape_cast %0 : vector<1x32x32xf32> to vector<32x32xf32>
    %c0_2 = arith.constant 0 : index
    %c0_3 = arith.constant 0 : index
    %c0_4 = arith.constant 0 : index
    %2 = vector.load %arg4[%c0_2, %c0_3, %c0_4] : memref<1x32x128xf32, #tpu.memory_space<vmem>>, vector<1x32x128xf32>
    %3 = vector.shape_cast %2 : vector<1x32x128xf32> to vector<32x128xf32>
    %cst = arith.constant dense<0.000000e+00> : vector<32x128xf32>
    %4 = tpu.matmul %1, %3, %cst {dimension_numbers = #tpu.dot_dimension_numbers<[1], [0], [0], [1], [0, 0, 1, 1], [], []>} : vector<32x32xf32>, vector<32x128xf32>, vector<32x128xf32> -> vector<32x128xf32>
    %c0_5 = arith.constant 0 : index
    %c0_6 = arith.constant 0 : index
    %c0_7 = arith.constant 0 : index
    %5 = vector.load %arg3[%c0_5, %c0_6, %c0_7] : memref<1x32x1xf32, #tpu.memory_space<vmem>>, vector<1x32x1xf32>
    %6 = vector.shape_cast %5 : vector<1x32x1xf32> to vector<32x1xf32>
    %7 = vector.broadcast %6 : vector<32x1xf32> to vector<32x128xf32>
    %8 = arith.addf %4, %7 : vector<32x128xf32>
    %9 = arith.negf %8 : vector<32x128xf32>
    %10 = math.exp %9 : vector<32x128xf32>
    %cst_8 = arith.constant 1.000000e+00 : f32
    %11 = vector.broadcast %cst_8 : f32 to vector<32x128xf32>
    %12 = arith.addf %11, %10 : vector<32x128xf32>
    %13 = arith.divf %11, %12 : vector<32x128xf32>
    %c0_9 = arith.constant 0 : index
    %c0_10 = arith.constant 0 : index
    %c0_11 = arith.constant 0 : index
    %14 = vector.load %arg5[%c0_9, %c0_10, %c0_11] : memref<1x32x128xf32, #tpu.memory_space<vmem>>, vector<1x32x128xf32>
    %15 = vector.shape_cast %14 : vector<1x32x128xf32> to vector<32x128xf32>
    %16 = vector.shape_cast %13 : vector<32x128xf32> to vector<1x32x128xf32>
    tpu.vector_store %arg5[%c0_9, %c0_10, %c0_11], %16 {strides = array<i32>} : memref<1x32x128xf32, #tpu.memory_space<vmem>>, vector<1x32x128xf32>,
    return
  }
  func.func @transform_0(%arg0: i32, %arg1: i32) -> (i32, i32, i32) {
    %c0_i32 = arith.constant 0 : i32
    %c0_i32_0 = arith.constant 0 : i32
    %c0_i32_1 = arith.constant 0 : i32
    return %arg0, %c0_i32, %c0_i32_0 : i32, i32, i32
  }
  func.func @transform_1(%arg0: i32, %arg1: i32) -> (i32, i32, i32) {
    %c0_i32 = arith.constant 0 : i32
    %c0_i32_0 = arith.constant 0 : i32
    %c0_i32_1 = arith.constant 0 : i32
    return %arg0, %c0_i32, %c0_i32_0 : i32, i32, i32
  }
  func.func @transform_2(%arg0: i32, %arg1: i32) -> (i32, i32, i32) {
    %c0_i32 = arith.constant 0 : i32
    %c0_i32_0 = arith.constant 0 : i32
    return %arg0, %c0_i32, %arg1 : i32, i32, i32
  }
  func.func @transform_3(%arg0: i32, %arg1: i32) -> (i32, i32, i32) {
    %c0_i32 = arith.constant 0 : i32
    %c0_i32_0 = arith.constant 0 : i32
    return %arg0, %c0_i32, %arg1 : i32, i32, i32
  }
}

</mosaic_0001>

<bundles_post_ra>
// kernel: tpu_custom_call.1
= control target key start
LH: loop header
LB: loop body
LE: loop exit
PB: predicated region body
PF: predicated region fallthrough
CT: control target
= control target key end

     0   :  { %8 = vsyncpa [#allocation3], 0  ;;  %s1010_s0 = inlined_call_operand.vmem [shape: f32[2,32,32], index: 0, kind: input, shape index: {}]   ;;  %s1011_s1 = inlined_call_operand.vmem [shape: f32[2,32,1], index: 1, kind: input, shape index: {}]   ;;  %s1012_s2 = inlined_call_operand.hbm [shape: f32[2,32,128], index: 2, kind: input, shape index: {}]   ;;  %s1013_s3 = inlined_call_operand.hbm [shape: f32[2,32,128], index: 3, kind: output, shape index: {}]  }
   0x1   :  { %10 = vsyncpa [#allocation3 + $0x1], 0 }
   0x2   :  { %11 = vsyncpa [#allocation4], 0 }
   0x3   :  { %13 = vsyncpa [#allocation4 + $0x1], 0  ;;  %s819_s12 = smov 0   ;;  %s821_s13 = smov 0  }
   0x4   :  { %s823_s14 = smov 0   ;;  %s825_s15 = smov 0  }
   0x5   :  { %s827_s16 = smov 0   ;;  %s829_s17 = smov 0  }
   0x6 LB: > { %s528_s18 = sadd.s32 4294967295, %s790_s17   ;;  %s529_s19 = sadd.s32 4294967294, %s790_s17   ;;  %s790_s17 = sphi %s829_s17, %s19_s17   ;;  %s786_s16 = sphi %s827_s16, %s1028_s16   ;;  %s782_s15 = sphi %s825_s15, %s1027_s15   ;;  %s778_s14 = sphi %s823_s14, %s1026_s14   ;;  %s774_s13 = sphi %s821_s13, %s1025_s13   ;;  %s770_s12 = sphi %s819_s12, %s1024_s12  }
   0x7   : > { %s31_s20 = sadd.s32 1, %s786_s16  ;;  %s92_s21 = sadd.s32 1, %s778_s14 }
   0x8   : > { %p33_p0 = scmp.ge.s32.totalorder %s31_s20, 2  ;;  %p99_p1 = scmp.ne.s32.totalorder %s778_s14, %s774_s13 }
   0x9   : > { %p100_p2 = scmp.eq.s32.totalorder %s790_s17, 0  ;;  %p105_p3 = scmp.ne.s32.totalorder %s774_s13, %s770_s12 }
   0xa   : > { %s1030_s20 = smov (%p33_p0, %s31_s20), 0  ;;  %p106_p5 = scmp.eq.s32.totalorder %s528_s18, 0 }
   0xb   : > { %p860_p4 = por %p100_p2, %p99_p1  ;;  %s87_s23 = ssub.s32 %s786_s16, %s1030_s20 }
   0xc   : > { %p131_p6 = scmp.eq.s32.totalorder %s528_s18, 1  ;;  %p90_p7 = scmp.eq.s32.totalorder %s87_s23, 0 }
   0xd   : > { %p866_p8 = por %p106_p5, %p105_p3  ;;  %p137_p10 = scmp.eq.s32.totalorder %s529_s19, 1 }
   0xe   : > { %p870_p9 = por %p131_p6, %p99_p1  ;;  %p605_p13 = scmp.lt.s32.totalorder %s790_s17, 2 }
   0xf   : > { %s875_s26 = scalar_select %p90_p7, %s778_s14, %s92_s21  }
  0x10   : > { %s1017_s25 = scalar_select %p870_p9, 1, 0 }
  0x11   : > { %p877_p11 = por %p137_p10, %p105_p3  ;;  %s173_s28 = sand.u32 1, %s778_s14  }
  0x12   : > { %s532_s29 = sshll.u32 %s173_s28, 5  ;;  %s555_s30 = sshll.u32 %s786_s16, 9 }
  0x13   : > { %s1018_s27 = scalar_select %p877_p11, 1, 0 }
  0x14   : > { %s888_s6 = scalar_lea.hbm %s1012_s2, %s555_s30  ;;  %s177_s7 = scalar_lea.vmem [#allocation2], %s532_s29 }
  0x15   : > { %s185_s8 = sshll.u32 %s177_s7, 4  ;;  %p894_p0 = pnand %p605_p13, %p860_p4  ;;  %s890_s8 = int_to_ptr.vmem [resolvable:$true] %s185_s8 }
  0x16   : > { %s899_s10 = scalar_lea.sflag [#allocation3], %s173_s28  ;;  %s678_s11 = scalar_lea.hbm %s888_s6, 512 }
  0x17   : > { %p679_p2 = scmp.ne.s32.totalorder %s888_s6, %s678_s11  ;;  %p680_p3 = pneg %p894_p0 }
  0x18   : > { %s683_s21 = scalar_lea.hbm %s1012_s2, 1024  ;;  %p684_p4 = scmp.lt.u32.totalorder %s888_s6, %s1012_s2 }
  0x19   : > { %p681_p5 = pnand %p680_p3, %p679_p2  ;;  %p685_p7 = scmp.lt.u32.totalorder %s683_s21, %s678_s11 }
  0x1a   : > { %p687_p13 = scmp.lt.u32.totalorder %s678_s11, %s888_s6 }
  0x1b   : > { %p682_p6 = pneg %p681_p5  ;;  %p686_p10 = por %p685_p7, %p684_p4 }
  0x1d   : > { %p688_p12 = por %p687_p13, %p686_p10 }
  0x1f   : > { %p689_p1 = pnand %p688_p12, %p682_p6 }
  0x21   : > { %692 = shalt.err (!%p689_p1)
}
  0x22   : > { %s693_s28 = scalar_lea.vmem %s890_s8, 512  ;;  %s792_s29 = smov [#allocation2]  }
  0x23   : > { %p694_p2 = scmp.ne.s32.totalorder %s890_s8, %s693_s28  ;;  %s698_s30 = sshll.u32 %s792_s29, 4  ;;  %s699_s30 = int_to_ptr.vmem [resolvable:$false] %s698_s30 }
  0x24   : > { %s700_s4 = scalar_lea.vmem %s699_s30, 1024  ;;  %p701_p9 = scmp.lt.s32.totalorder %s890_s8, %s699_s30 }
  0x25   : > { %p696_p5 = pnand %p694_p2, %p680_p3  ;;  %p702_p4 = scmp.lt.s32.totalorder %s700_s4, %s693_s28 }
  0x27   : > { %p697_p11 = pneg %p696_p5  ;;  %p703_p7 = por %p702_p4, %p701_p9 }
  0x29   : > { %p704_p10 = pnand %p703_p7, %p697_p11 }
  0x2b   : > { %707 = shalt.err (!%p704_p10)
}
  0x2c   : > { %s793_s5 = smov 128   ;;  %s794_s7 = smov 8  }
  0x2d   : > { %600 = dma.hbm_to_vmem [thread:$0]  (!%p894_p0), %s888_s6, 512, %s890_s8, %s899_s10, %s793_s5, %s793_s5, %s794_s7  }
  0x2e   : > { %p193_p12 = scmp.lt.s32.totalorder %s790_s17, 3  ;;  %p1020_p1 = scmp.ge.s32.totalorder %s790_s17, 1 }
  0x30   : > { %p194_p3 = pnand %p1020_p1, %p193_p12 }
  0x31   : > { %s931_s11 = sand.u32 (!%p194_p3), 1, %s774_s13  }
  0x32   : > { %197 = sbr.rel (%p194_p3) target bundleno = 329 (0x149), region = 32  ;;  %s536_s18 = sshll.u32 (!%p194_p3), %s931_s11, 5 }
  0x33   : > { %s200_s19 = scalar_lea.sflag (!%p194_p3), [#allocation3], %s931_s11  ;;  %s203_s21 = scalar_lea.vmem (!%p194_p3), [#allocation2], %s536_s18 }
  0x39   : > { %761 = dma.done.wait (%p866_p8), %s200_s19, 512  }
  0x3a   : > { %763 = vsyncadd (%p866_p8), %s200_s19, 4294966784  ;;  %p236_p9 = scmp.lt.s32.totalorder %s782_s15, 1  ;;  %v795_v0 = vmov 0   ;;  %vm278_vm0 = vcmask 261120   ;;  %v250_v1 = vld [vmem:[%s203_s21] sm:$0xff]  ;;  %v251_v2 = vld [vmem:[%s203_s21 + $0x8] sm:$0xff] }
  0x3b   : > { %661 = vset.pattern.permute.xlu1 %v795_v0  ;;  %660 = vset.pattern.permute.xlu0 %v795_v0  ;;  %v252_v3 = vld [vmem:[%s203_s21 + $0x10] sm:$0xff]  ;;  %v581_v4 = vpack.c.bf16 %v251_v2, %v250_v1  ;;  %v253_v5 = vld [vmem:[%s203_s21 + $0x18] sm:$0xff]  ;;  %s558_s29 = sshll.u32 %s782_s15, 9  ;;  %s235_s30 = scalar_lea.vmem [#allocation5], %s536_s18 }
  0x3c   : > { %s237_s6 = scalar_select %p236_p9, %s782_s15, 1  ;;  %v585_v8 = vpack.c.bf16 %v253_v5, %v252_v3 }
  0x3d   : > { %582 = vmatprep.subr.bf16.mxu0 %v581_v4  ;;  %589 = vmatprep.subr.bf16.mxu1 %v581_v4  ;;  %s419_s4 = sshll.u32 %s235_s30, 4  ;;  %s959_s19 = scalar_lea.hbm %s1013_s3, %s558_s29  ;;  %s961_s4 = int_to_ptr.vmem [resolvable:$true] %s419_s4 }
  0x3e   : > { %s556_s8 = sshll.u32 %s237_s6, 5  ;;  %584 = vmatpush3.bf16.msra.mxu0 %v581_v4  ;;  %591 = vmatpush3.bf16.msra.mxu1 %v581_v4  ;;  %s405_s15 = scalar_lea.sflag [#allocation4], %s931_s11 }
  0x3f   : > { %s240_s22 = scalar_lea.vmem %s1010_s0, %s556_s8  ;;  %s245_s24 = scalar_lea.vmem %s1011_s1, %s556_s8  ;;  %586 = vmatprep.subr.bf16.mxu0 %v585_v8  ;;  %590 = vmatprep.subr.bf16.mxu1 %v585_v8 }
  0x40   : > { %v246_v6 = vld [vmem:[%s240_s22] sm:$0xff]  ;;  %v248_v7 = vld [vmem:[%s240_s22 + $0x10] sm:$0xff]  ;;  %v257_v11 = vld [vmem:[%s245_s24 + $0x18] sm:$0xff]  ;;  %s708_s18 = scalar_lea.vmem %s961_s4, 512  ;;  %p1021_p11 = scmp.ne.s32.totalorder %s1017_s25, 0 }
  0x41   : > { %575 = vmatprep.mubr.msk.f32.mxu0 %vm278_vm0, %v246_v6  ;;  %578 = vmatprep.mubr.msk.f32.mxu1 %vm278_vm0, %v248_v7  ;;  %v256_v9 = vld [vmem:[%s245_s24 + $0x10] sm:$0xff]  ;;  %v254_v10 = vld [vmem:[%s245_s24] sm:$0xff]  ;;  %v255_v12 = vld [vmem:[%s245_s24 + $0x8] sm:$0xff]  ;;  %p709_p8 = scmp.ne.s32.totalorder %s961_s4, %s708_s18  ;;  %s796_s21 = smov [#allocation5]  }
  0x42   : > { %270 = vperm.xlu1 %661, %v256_v9   ;;  %260 = vperm.xlu0 %660, %v254_v10   ;;  %v247_v13 = vld [vmem:[%s240_s22 + $0x8] sm:$0xff]  ;;  %v249_v14 = vld [vmem:[%s240_s22 + $0x18] sm:$0xff]  ;;  %s712_s6 = sshll.u32 %s796_s21, 4  ;;  %s713_s6 = int_to_ptr.vmem [resolvable:$false] %s712_s6 }
  0x43   : > { %588 = vmatpush3.bf16.msra.mxu0 %v585_v8  ;;  %592 = vmatpush3.bf16.msra.mxu1 %v585_v8  ;;  %p710_p0 = pnand %p709_p8, %p1021_p11  ;;  %s714_s8 = scalar_lea.vmem %s713_s6, 1024 }
  0x44   : > { %p715_p13 = scmp.lt.s32.totalorder %s961_s4, %s713_s6  ;;  %p716_p2 = scmp.lt.s32.totalorder %s714_s8, %s708_s18 }
  0x45   : > { %p711_p6 = pneg %p710_p0 }
  0x46   : > { %275 = vperm.xlu1 %661, %v257_v11   ;;  %265 = vperm.xlu0 %660, %v255_v12   ;;  %p717_p5 = por %p716_p2, %p715_p13 }
  0x47   : > { %576 = vmatmul.mubr.msk.f32.vlgmr.msra.gmra.mrb[0].mxu0 %vm278_vm0, %v247_v13  ;;  %579 = vmatmul.mubr.msk.f32.vlgmr.msra.gmra.mrb[0].mxu1 %vm278_vm0, %v249_v14 }
  0x48   : > { %p718_p4 = pnand %p717_p5, %p711_p6 }
  0xc1   : > { %v271_v15 = vpop.permute.xlu1 %270  ;;  %v261_v16 = vpop.permute.xlu0 %260 }
  0xc5   : > { %v276_v17 = vpop.permute.xlu1 %275  ;;  %v266_v18 = vpop.permute.xlu0 %265 }
 0x11a   : > { %v577_v19 = vpop.f32.mrb[0].mxu0  ;;  %v580_v20 = vpop.f32.mrb[0].mxu1 }
 0x11b   : > { %v363_v21 = vadd.f32 %v577_v19, %v266_v18  ;;  %v373_v22 = vadd.f32 %v580_v20, %v276_v17  ;;  %v357_v23 = vpop.f32.mrb[1].mxu0  ;;  %v367_v24 = vpop.f32.mrb[1].mxu1 }
 0x11c   : > { %v358_v25 = vadd.f32 %v357_v23, %v261_v16  ;;  %v368_v26 = vadd.f32 %v367_v24, %v271_v15 }
 0x11d   : > { %v547_v27 = vmul.f32 -1.442695, %v363_v21  ;;  %v549_v28 = vmul.f32 -1.442695, %v373_v22 }
 0x11e   : > { %v546_v29 = vmul.f32 -1.442695, %v358_v25  ;;  %v548_v30 = vmul.f32 -1.442695, %v368_v26 }
 0x11f   : > { %662 = vpow2.f32 %v547_v27 }
 0x120   : > { %664 = vpow2.f32 %v549_v28 }
 0x121   : > { %666 = vpow2.f32 %v546_v29 }
 0x122   : > { %668 = vpow2.f32 %v548_v30 }
 0x129   : > { %v663_v31 = vpop.eup %662 }
 0x12a   : > { %v665_v32 = vpop.eup %664  ;;  %v389_v33 = vadd.f32 1.0, %v663_v31 }
 0x12b   : > { %v667_v34 = vpop.eup %666  ;;  %v391_v35 = vadd.f32 1.0, %v665_v32 }
 0x12c   : > { %v669_v36 = vpop.eup %668  ;;  %670 = vrcp.f32 %v389_v33  ;;  %v388_v37 = vadd.f32 1.0, %v667_v34 }
 0x12d   : > { %672 = vrcp.f32 %v391_v35  ;;  %v390_v38 = vadd.f32 1.0, %v669_v36 }
 0x12e   : > { %674 = vrcp.f32 %v388_v37 }
 0x12f   : > { %676 = vrcp.f32 %v390_v38 }
 0x136   : > { %v671_v39 = vpop.eup %670 }
 0x137   : > { %v673_v40 = vpop.eup %672  ;;  %401 = vst [vmem:[%s235_s30 + $0x8] sm:$0xff] %v671_v39 }
 0x138   : > { %v675_v41 = vpop.eup %674  ;;  %403 = vst [vmem:[%s235_s30 + $0x18] sm:$0xff] %v673_v40 }
 0x139   : > { %v677_v42 = vpop.eup %676  ;;  %400 = vst [vmem:[%s235_s30] sm:$0xff] %v675_v41 }
 0x13a   : > { %402 = vst [vmem:[%s235_s30 + $0x10] sm:$0xff] %v677_v42 }
 0x13b   : > { %721 = shalt.err (!%p718_p4)
}
 0x13c   : > { %s722_s9 = scalar_lea.hbm %s959_s19, 512  ;;  %s726_s23 = scalar_lea.hbm %s1013_s3, 1024 }
 0x13d   : > { %p723_p7 = scmp.ne.s32.totalorder %s959_s19, %s722_s9  ;;  %p727_p1 = scmp.lt.u32.totalorder %s959_s19, %s1013_s3 }
 0x13e   : > { %p728_p3 = scmp.lt.u32.totalorder %s726_s23, %s722_s9  ;;  %p730_p8 = scmp.lt.u32.totalorder %s722_s9, %s959_s19 }
 0x13f   : > { %p724_p10 = pnand %p723_p7, %p1021_p11 }
 0x140   : > { %p729_p9 = por %p728_p3, %p727_p1 }
 0x141   : > { %p725_p12 = pneg %p724_p10 }
 0x142   : > { %p731_p0 = por %p730_p8, %p729_p9 }
 0x144   : > { %p732_p6 = pnand %p731_p0, %p725_p12 }
 0x146   : > { %735 = shalt.err (!%p732_p6)
}
 0x147   : > { %s797_s29 = smov 128   ;;  %s798_s30 = smov 8  }
 0x148   : > { %595 = dma.vmem_to_hbm [thread:$0]  (%p1021_p11), %s961_s4, 512, %s959_s19, %s405_s15, %s797_s29, %s797_s29, %s798_s30  }
 0x149 PF: > { %s434_s5 = sand.u32 1, %s770_s12   ;;  %p1022_p13 = scmp.ne.s32.totalorder %s1018_s27, 0 }
 0x14a   : > { %p1023_p2 = scmp.ge.s32.totalorder %s790_s17, 2  ;;  %s435_s7 = scalar_lea.sflag [#allocation4], %s434_s5 }
 0x14c   : > { %p602_p5 = pnand %p1023_p2, %p1022_p13 }
 0x14e   : > { %765 = dma.done.wait (!%p602_p5), %s435_s7, 512  }
 0x14f   : > { %767 = vsyncadd (!%p602_p5), %s435_s7, 4294966784  ;;  %s19_s17 = sadd.s32 1, %s790_s17   ;;  %s1024_s12 = smov %s774_s13 }
 0x150   : > { %p16_p4 = scmp.ge.s32.totalorder %s19_s17, 4   ;;  %s1025_s13 = smov %s778_s14 }
 0x151   : > { %s1026_s14 = smov %s875_s26  ;;  %s1027_s15 = smov %s786_s16 }
 0x152   : > { %s1028_s16 = smov %s1030_s20  ;;  %18 = sbr.rel (!%p16_p4) target bundleno = 6 (0x6), region = 83 }
 0x159   :  { %440 = vsyncpa [#allocation3], 1 }
 0x15a   :  { %442 = vsyncpa [#allocation3 + $0x1], 1 }
 0x15b   :  { %443 = vsyncpa [#allocation4], 1 }
 0x15c   :  { %445 = vsyncpa [#allocation4 + $0x1], 1 }

</bundles_post_ra>
